<compile_context>
chip_gen: v7x
topology: tpu7x:2x2x1
jax: 0.10.0
libtpu: 0.0.40
codegen_flags: <defaults>
</compile_context>

<pallas_src>
import functools

import jax
import jax.numpy as jnp
import numpy as np
from jax import lax
from jax.experimental import pallas as pl
from jax.experimental.pallas import tpu as pltpu

MIU = 1.0
CLASSES = 3

_LANE = 128
_STRIP_ROWS = 128        # rows per in-kernel strip (64 KiB f32 live per array)
_MAX_BLOCK_ROWS = 8192   # 8192 x 128 f32 = 4 MiB per input per grid step
_FUSED_MAX_ROWS = 512    # below this, use the single fused invocation path


def _round_up(x, m):
    return ((x + m - 1) // m) * m


def _acloss_block_kernel(pred_ref, lab_ref, out_ref, *, block_rows, strip_rows,
                         valid_rows, needs_mask):
    """One (block_rows, 128) tile -> (1, 2, 8, 128) partial sums (rin, rout)."""
    nstrips = block_rows // strip_rows
    block_row0 = pl.program_id(0) * block_rows

    def strip_body(s, carry):
        rin_acc, rout_acc = carry
        r0 = pl.multiple_of(s * strip_rows, strip_rows)
        p = pred_ref[pl.ds(r0, strip_rows), :].astype(jnp.float32)
        l = lab_ref[pl.ds(r0, strip_rows), :].astype(jnp.float32)
        if needs_mask:
            # Only the tail of the last block is invalid (garbage rows from the
            # partially-filled DMA buffer); zero them so they contribute 0.
            row = (block_row0 + r0
                   + lax.broadcasted_iota(jnp.int32, (strip_rows, _LANE), 0))
            valid = row < valid_rows
            p = jnp.where(valid, p, 0.0)
            l = jnp.where(valid, l, 0.0)
        rin = p * (l - 1.0) ** 2          # (label - c_in)^2,  c_in  = 1
        rout = (1.0 - p) * (l * l)        # (label - c_out)^2, c_out = 0
        # (strip_rows, 128) -> (8, 128): sublane-group adds only (VPU, no XLU).
        rin_acc = rin_acc + jnp.sum(rin.reshape(strip_rows // 8, 8, _LANE), axis=0)
        rout_acc = rout_acc + jnp.sum(rout.reshape(strip_rows // 8, 8, _LANE), axis=0)
        return rin_acc, rout_acc

    zeros = jnp.zeros((8, _LANE), jnp.float32)
    rin_acc, rout_acc = lax.fori_loop(0, nstrips, strip_body, (zeros, zeros))
    out_ref[0, 0] = rin_acc
    out_ref[0, 1] = rout_acc


def _acloss_fused_kernel(pred_ref, lab_ref, out_ref, *, miu):
    """Whole (rows, 128) problem in one invocation -> final (1, 1) loss."""
    p = pred_ref[...].astype(jnp.float32)
    l = lab_ref[...].astype(jnp.float32)
    rin = p * (l - 1.0) ** 2
    rout = (1.0 - p) * (l * l)
    rin_tot = jnp.sum(jnp.sum(rin, axis=0, keepdims=True), axis=1, keepdims=True)
    rout_tot = jnp.sum(jnp.sum(rout, axis=0, keepdims=True), axis=1, keepdims=True)
    # torch `length` term is exactly 0 for a 0-dim tensor -> elided.
    out_ref[...] = miu * jnp.abs(rin_tot) + jnp.abs(rout_tot)


def ac_loss(predication, label, miu=MIU):
    """Pallas implementation of ACLoss.forward.  Inputs are NCHW, any float dtype."""
    assert predication.shape == label.shape
    miu = float(miu)
    n_elems = int(np.prod(predication.shape))
    rows = pl.cdiv(n_elems, _LANE)
    lane_pad = rows * _LANE - n_elems

    def to_slab(x):
        flat = x.reshape(-1)
        if lane_pad:
            # < 128 zeros, only to make the flat view lane-reshapeable; zeros
            # contribute 0 to both region sums.  No block-alignment padding.
            flat = jnp.pad(flat, (0, lane_pad))
        return flat.reshape(rows, _LANE)

    pred2d = to_slab(predication)
    lab2d = to_slab(label)

    if rows <= _FUSED_MAX_ROWS:
        # Small-problem fast path: one invocation, final loss computed in-kernel,
        # no partials round trip / second XLA reduction kernel.
        out = pl.pallas_call(
            functools.partial(_acloss_fused_kernel, miu=miu),
            out_shape=jax.ShapeDtypeStruct((1, 1), jnp.float32),
        )(pred2d, lab2d)
        return out[0, 0]

    # Pipelined streaming path.
    target = pl.cdiv(rows, 4)  # aim for >= ~4 blocks so v7x megacore stays balanced
    block_rows = min(_MAX_BLOCK_ROWS, _round_up(target, _STRIP_ROWS))
    num_blocks = pl.cdiv(rows, block_rows)
    needs_mask = (rows % block_rows) != 0

    parts = pl.pallas_call(
        functools.partial(_acloss_block_kernel, block_rows=block_rows,
                          strip_rows=_STRIP_ROWS, valid_rows=rows,
                          needs_mask=needs_mask),
        out_shape=jax.ShapeDtypeStruct((num_blocks, 2, 8, _LANE), jnp.float32),
        grid=(num_blocks,),
        in_specs=[
            pl.BlockSpec((block_rows, _LANE), lambda i: (i, 0)),
            pl.BlockSpec((block_rows, _LANE), lambda i: (i, 0)),
        ],
        out_specs=pl.BlockSpec((1, 2, 8, _LANE), lambda i: (i, 0, 0, 0)),
        compiler_params=pltpu.CompilerParams(
            dimension_semantics=("parallel",),
            vmem_limit_bytes=48 << 20,
        ),
    )(pred2d, lab2d)

    region_in = jnp.abs(jnp.sum(parts[:, 0]))
    region_out = jnp.abs(jnp.sum(parts[:, 1]))
    # torch `length` term is (x - x) / ((x - x) + 1e-8) == 0 exactly -> elided.
    return miu * region_in + region_out


def ac_loss_ref(predication, label, miu=MIU):
    """Pure-JAX reference mirroring the torch module (including the dead sobel path)."""
    C = predication.shape[1]
    p = predication.astype(jnp.float32)
    sobel_x = jnp.array([[-1, 0, 1], [-2, 0, 2], [-1, 0, 1]], jnp.float32)
    sobel_y = jnp.array([[-1, -2, -1], [0, 0, 0], [1, 2, 1]], jnp.float32)
    wx = jnp.broadcast_to(sobel_x, (C, 1, 3, 3))
    wy = jnp.broadcast_to(sobel_y, (C, 1, 3, 3))
    dn = lax.conv_dimension_numbers(p.shape, wx.shape, ("NCHW", "OIHW", "NCHW"))
    gx = lax.conv_general_dilated(p, wx, (1, 1), [(1, 1), (1, 1)],
                                  dimension_numbers=dn, feature_group_count=C)
    gy = lax.conv_general_dilated(p, wy, (1, 1), [(1, 1), (1, 1)],
                                  dimension_numbers=dn, feature_group_count=C)
    length = jnp.sum(jnp.abs(jnp.sqrt(gx ** 2 + gy ** 2 + 1e-8)))
    length = (length - length) / ((length - length) + 1e-8)   # scalar min/max -> 0
    lab = label.astype(jnp.float32)
    region_in = jnp.abs(jnp.sum(p * (lab - 1.0) ** 2))
    region_out = jnp.abs(jnp.sum((1.0 - p) * lab ** 2))
    return miu * region_in + region_out + length


if __name__ == "__main__":
    key = jax.random.PRNGKey(0)
    shapes = [
        (2, CLASSES, 16, 16),   # 12 rows   -> fused single-invocation path
        (3, CLASSES, 96, 96),   # 648 rows  -> pipelined path with masked tail block
        (2, CLASSES, 17, 17),   # n_elems not a multiple of 128 -> lane-pad path
    ]
    for shp in shapes:
        key, k1, k2 = jax.random.split(key, 3)
        # prediction: per-pixel class probabilities; label: hard 0/1 masks
        pred = jax.nn.softmax(jax.random.normal(k1, shp, jnp.float32), axis=1)
        label = (jax.random.uniform(k2, shp) > 0.5).astype(jnp.float32)

        out = jax.block_until_ready(ac_loss(pred, label))
        ref = ac_loss_ref(pred, label)
        assert np.allclose(np.asarray(out), np.asarray(ref), rtol=1e-3, atol=1e-3), (
            shp, float(out), float(ref))

    print("KERNEL_OK")
</pallas_src>

<mosaic_0001>
module attributes {stable_mosaic.version = 11 : i64} {
  func.func @_acloss_fused_kernel(%arg0: memref<12x128xf32, #tpu.memory_space<vmem>>, %arg1: memref<12x128xf32, #tpu.memory_space<vmem>>, %arg2: memref<1x1xf32, #tpu.memory_space<vmem>>) attributes {dimension_semantics = [], scalar_prefetch = 0 : i64, scratch_operands = 0 : i64, tpu.core_type = #tpu.core_type<tc>} {
    %c0 = arith.constant 0 : index
    %c0_0 = arith.constant 0 : index
    %0 = vector.load %arg0[%c0, %c0_0] : memref<12x128xf32, #tpu.memory_space<vmem>>, vector<12x128xf32>
    %c0_1 = arith.constant 0 : index
    %c0_2 = arith.constant 0 : index
    %1 = vector.load %arg1[%c0_1, %c0_2] : memref<12x128xf32, #tpu.memory_space<vmem>>, vector<12x128xf32>
    %cst = arith.constant 1.000000e+00 : f32
    %2 = vector.broadcast %cst : f32 to vector<12x128xf32>
    %3 = arith.subf %1, %2 : vector<12x128xf32>
    %4 = arith.mulf %3, %3 : vector<12x128xf32>
    %5 = arith.mulf %0, %4 : vector<12x128xf32>
    %cst_3 = arith.constant 1.000000e+00 : f32
    %6 = vector.broadcast %cst_3 : f32 to vector<12x128xf32>
    %7 = arith.subf %6, %0 : vector<12x128xf32>
    %8 = arith.mulf %1, %1 : vector<12x128xf32>
    %9 = arith.mulf %7, %8 : vector<12x128xf32>
    %cst_4 = arith.constant dense<0.000000e+00> : vector<128xf32>
    %10 = vector.multi_reduction <add>, %5, %cst_4 [0] : vector<12x128xf32> to vector<128xf32>
    %11 = vector.shape_cast %10 : vector<128xf32> to vector<1x128xf32>
    %cst_5 = arith.constant dense<0.000000e+00> : vector<1xf32>
    %12 = vector.multi_reduction <add>, %11, %cst_5 [1] : vector<1x128xf32> to vector<1xf32>
    %13 = vector.shape_cast %12 : vector<1xf32> to vector<1x1xf32>
    %cst_6 = arith.constant dense<0.000000e+00> : vector<128xf32>
    %14 = vector.multi_reduction <add>, %9, %cst_6 [0] : vector<12x128xf32> to vector<128xf32>
    %15 = vector.shape_cast %14 : vector<128xf32> to vector<1x128xf32>
    %cst_7 = arith.constant dense<0.000000e+00> : vector<1xf32>
    %16 = vector.multi_reduction <add>, %15, %cst_7 [1] : vector<1x128xf32> to vector<1xf32>
    %17 = vector.shape_cast %16 : vector<1xf32> to vector<1x1xf32>
    %18 = math.absf %13 : vector<1x1xf32>
    %cst_8 = arith.constant 1.000000e+00 : f32
    %19 = vector.broadcast %cst_8 : f32 to vector<1x1xf32>
    %20 = arith.mulf %19, %18 : vector<1x1xf32>
    %21 = math.absf %17 : vector<1x1xf32>
    %22 = arith.addf %20, %21 : vector<1x1xf32>
    %c0_9 = arith.constant 0 : index
    %c0_10 = arith.constant 0 : index
    %23 = vector.load %arg2[%c0_9, %c0_10] : memref<1x1xf32, #tpu.memory_space<vmem>>, vector<1x1xf32>
    tpu.vector_store %arg2[%c0_9, %c0_10], %22 {strides = array<i32>} : memref<1x1xf32, #tpu.memory_space<vmem>>, vector<1x1xf32>,
    return
  }
}

</mosaic_0001>

<bundles_post_ra>
// kernel: tpu_custom_call.1
= control target key start
LH: loop header
LB: loop body
LE: loop exit
PB: predicated region body
PF: predicated region fallthrough
CT: control target
= control target key end

     0   :  { %7 = vsyncpa [#allocation3], 0  ;;  %s233_s0 = inlined_call_operand.hbm [shape: f32[12,128], index: 0, kind: input, shape index: {}]   ;;  %s234_s1 = inlined_call_operand.hbm [shape: f32[12,128], index: 1, kind: input, shape index: {}]   ;;  %s235_s2 = inlined_call_operand.hbm [shape: f32[1,1], index: 2, kind: output, shape index: {}]  }
   0x1   :  { %8 = vsyncpa [#allocation6], 0 }
   0x2   :  { %9 = vsyncpa [#allocation4], 0  ;;  %s177_s9 = smov [#allocation2]   ;;  %s105_s13 = scalar_lea.hbm %s233_s0, 256 }
   0x3   :  { %s15_s10 = sshll.u32 %s177_s9, 4  ;;  %p106_p0 = scmp.ne.s32.totalorder %s233_s0, %s105_s13  ;;  %s16_s10 = int_to_ptr.vmem [resolvable:$true] %s15_s10 }
   0x4   :  { %p109_p1 = scmp.lt.u32.totalorder %s105_s13, %s233_s0 }
   0x6   :  { %p111_p2 = pnand %p109_p1, %p106_p0 }
   0x8   :  { %114 = shalt.err (!%p111_p2)
}
   0x9   :  { %s115_s18 = scalar_lea.vmem %s16_s10, 256  ;;  %p120_p4 = scmp.lt.s32.totalorder %s16_s10, %s16_s10 }
   0xa   :  { %p116_p3 = scmp.ne.s32.totalorder %s16_s10, %s115_s18  ;;  %p121_p5 = scmp.lt.s32.totalorder %s115_s18, %s115_s18 }
   0xc   :  { %p122_p6 = por %p121_p5, %p120_p4 }
   0xe   :  { %p123_p7 = pnand %p122_p6, %p116_p3 }
  0x10   :  { %126 = shalt.err (!%p123_p7)
}
  0x11   :  { %s178_s19 = smov 128   ;;  %s179_s20 = smov 8  }
  0x12   :  { %21 = dma.hbm_to_vmem [thread:$0]  %s233_s0, 256, %s16_s10, [#allocation3], %s178_s19, %s178_s19, %s179_s20  }
  0x13   :  { %s180_s23 = smov [#allocation5]   ;;  %s127_s27 = scalar_lea.hbm %s234_s1, 256 }
  0x14   :  { %s27_s24 = sshll.u32 %s180_s23, 4  ;;  %p128_p8 = scmp.ne.s32.totalorder %s234_s1, %s127_s27  ;;  %s28_s24 = int_to_ptr.vmem [resolvable:$true] %s27_s24 }
  0x15   :  { %p131_p9 = scmp.lt.u32.totalorder %s127_s27, %s234_s1 }
  0x17   :  { %p133_p10 = pnand %p131_p9, %p128_p8 }
  0x19   :  { %136 = shalt.err (!%p133_p10)
}
  0x1a   :  { %s137_s4 = scalar_lea.vmem %s28_s24, 256  ;;  %p142_p12 = scmp.lt.s32.totalorder %s28_s24, %s28_s24 }
  0x1b   :  { %p138_p11 = scmp.ne.s32.totalorder %s28_s24, %s137_s4  ;;  %p143_p13 = scmp.lt.s32.totalorder %s137_s4, %s137_s4 }
  0x1d   :  { %p144_p0 = por %p143_p13, %p142_p12 }
  0x1f   :  { %p145_p1 = pnand %p144_p0, %p138_p11 }
  0x21   :  { %148 = shalt.err (!%p145_p1)
}
  0x22   :  { %33 = dma.hbm_to_vmem [thread:$0]  %s234_s1, 256, %s28_s24, [#allocation6], %s178_s19, %s178_s19, %s179_s20  }
  0x23   :  { %171 = dma.done.wait [#allocation3], 256  }
  0x24   :  { %172 = vsyncadd [#allocation3], 4294967040 }
  0x25   :  { %173 = dma.done.wait [#allocation6], 256  }
  0x26   :  { %174 = vsyncadd [#allocation6], 4294967040  ;;  %v40_v0 = vld [vmem:[#allocation2] sm:$0xff]  ;;  %v41_v1 = vld [vmem:[#allocation2 + $0x8] sm:$0xf]  ;;  %vm56_vm0 = vcmask 1043456  }
  0x27   :  { %v42_v2 = vld [vmem:[#allocation5] sm:$0xff]  ;;  %v43_v3 = vld [vmem:[#allocation5 + $0x8] sm:$0xf]  ;;  %v50_v5 = vsub.f32 1.0, %v40_v0  ;;  %v51_v6 = vsub.f32 1.0, %v41_v1  ;;  %s181_s1 = smov [#allocation7]  }
  0x28   :  { %v98_v4 = vadd.f32 -1.0, %v42_v2  ;;  %v52_v7 = vmul.f32 %v42_v2, %v42_v2  ;;  %v99_v8 = vadd.f32 -1.0, %v43_v3  ;;  %v53_v9 = vmul.f32 %v43_v3, %v43_v3  ;;  %s88_s6 = sshll.u32 %s181_s1, 4  ;;  %s89_s6 = int_to_ptr.vmem [resolvable:$true] %s88_s6 }
  0x29   :  { %vm80_vm1 = vcmask 0   ;;  %s149_s7 = scalar_lea.vmem %s89_s6, 16  ;;  %s153_s8 = scalar_lea.vmem %s89_s6, 32 }
  0x2a   :  { %v46_v10 = vmul.f32 %v98_v4, %v98_v4  ;;  %v54_v11 = vmul.f32 %v52_v7, %v50_v5  ;;  %v47_v12 = vmul.f32 %v99_v8, %v99_v8  ;;  %v55_v13 = vmul.f32 %v53_v9, %v51_v6  ;;  %p150_p2 = scmp.ne.s32.totalorder %s89_s6, %s149_s7  ;;  %p154_p3 = scmp.lt.s32.totalorder %s89_s6, %s89_s6 }
  0x2b   :  { %p155_p4 = scmp.lt.s32.totalorder %s153_s8, %s149_s7 }
  0x2c   :  { %v48_v14 = vmul.f32 %v46_v10, %v40_v0  ;;  %v49_v15 = vmul.f32 %v47_v12, %v41_v1  ;;  %v67_v16 = vsel %vm56_vm0, %v55_v13, 0.0 }
  0x2d   :  { %v68_v17 = vadd.f32 %v67_v16, %v54_v11  ;;  %p156_p5 = por %p155_p4, %p154_p3 }
  0x2e   :  { %v57_v18 = vsel %vm56_vm0, %v49_v15, 0.0 }
  0x2f   :  { %v58_v19 = vadd.f32 %v57_v18, %v48_v14  ;;  %v69_v20 = vrot.slane %v68_v17, 4  ;;  %p157_p6 = pnand %p156_p5, %p150_p2 }
  0x31   :  { %v59_v21 = vrot.slane %v58_v19, 4  ;;  %v70_v22 = vadd.f32 %v69_v20, %v68_v17 }
  0x33   :  { %v60_v23 = vadd.f32 %v59_v21, %v58_v19  ;;  %v71_v24 = vrot.slane %v70_v22, 2 }
  0x35   :  { %v61_v25 = vrot.slane %v60_v23, 2  ;;  %v72_v26 = vadd.f32 %v71_v24, %v70_v22 }
  0x37   :  { %v62_v27 = vadd.f32 %v61_v25, %v60_v23  ;;  %v73_v29 = vrot.slane %v72_v26, 1 }
  0x39   :  { %v63_v28 = vrot.slane %v62_v27, 1  ;;  %v74_v31 = vadd.f32 %v73_v29, %v72_v26 }
  0x3b   :  { %v64_v30 = vadd.f32 %v63_v28, %v62_v27 }
  0x3d   :  { %65 = vadd.xlane.f32.xlu0 %v64_v30 }
  0x41   :  { %75 = vadd.xlane.f32.xlu0 %v74_v31 }
  0xca   :  { %v66_v32 = vpop.xlane.xlu0 %65 }
  0xcb   :  { %v77_v34 = vand.u32 2147483647, %v66_v32 }
  0xce   :  { %v76_v33 = vpop.xlane.xlu0 %75 }
  0xcf   :  { %v78_v35 = vand.u32 2147483647, %v76_v33 }
  0xd1   :  { %v79_v36 = vadd.f32 %v78_v35, %v77_v34 }
  0xd3   :  { %81 = vst.msk [vmem:[#allocation7] sm:$0x1] %vm80_vm1, %v79_v36 }
  0xd4   :  { %160 = shalt.err (!%p157_p6)
}
  0xd5   :  { %s161_s11 = scalar_lea.hbm %s235_s2, 16 }
  0xd6   :  { %p162_p7 = scmp.ne.s32.totalorder %s235_s2, %s161_s11  ;;  %p165_p8 = scmp.lt.u32.totalorder %s161_s11, %s235_s2 }
  0xd8   :  { %p167_p9 = pnand %p165_p8, %p162_p7 }
  0xda   :  { %170 = shalt.err (!%p167_p9)
}
  0xdb   :  { %91 = dma.vmem_to_hbm [thread:$0]  %s89_s6, 16, %s235_s2, [#allocation4]  }
  0xdc   :  { %175 = dma.done.wait [#allocation4], 16  }
  0xdd   :  { %176 = vsyncadd [#allocation4], 4294967280 }
  0xde   :  { %95 = vsyncpa [#allocation3], 1 }
  0xdf   :  { %96 = vsyncpa [#allocation6], 1 }
  0xe0   :  { %97 = vsyncpa [#allocation4], 1 }

</bundles_post_ra>
